<compile_context>
chip_gen: v6e
topology: v6e:2x2x1
jax: 0.10.0
libtpu: 0.0.40
codegen_flags: <defaults>
</compile_context>

<pallas_src>
import numpy as np
from itertools import permutations

import jax
import jax.numpy as jnp
from jax.experimental import pallas as pl
from jax.experimental.pallas import tpu as pltpu

# ----------------------------- static config --------------------------------
N_DIM = 32
NHIDDEN = 32
N_SPEAKERS = 2
NUM_GRAPH_LAYERS = 4
SPK_EMBS = "t"                  # 't' -> speaker embedding added to the text modality
DIA_LEN = (23, 20)              # per-dialogue utterance counts (static at trace time)

LANE = 128                      # lane-padded feature / hidden width


def _round_up(x, m):
    return ((x + m - 1) // m) * m


# ------------------------------ Pallas kernel --------------------------------
def _gcn_kernel(feat_ref, adj_ref, w1_ref, b1_ref, wk_ref, bk_ref,
                out_ref, x1_ref, gnn_ref):
    """One grid step = (dialogue b, graph layer l).

       l == 0    : x1 = feat_b @ W1 + b1 ; gnn <- x1            (seed VMEM scratch)
       every l   : gnn <- gnn + A_b @ (gnn @ W_l + b_l)         (bf16 MXU, f32 acc)
       l == last : out_b = [x1 | gnn]                           (lane-dense 256-wide store)
    """
    layer = pl.program_id(1)
    n_layers = pl.num_programs(1)

    @pl.when(layer == 0)
    def _seed():
        x1 = jnp.dot(feat_ref[...], w1_ref[...],
                     preferred_element_type=jnp.float32) + b1_ref[...]
        x1_ref[...] = x1
        gnn_ref[...] = x1

    gnn = gnn_ref[...]                                            # (M, 128) f32 carry
    xw = jnp.dot(gnn, wk_ref[...],
                 preferred_element_type=jnp.float32) + bk_ref[...]
    gnn_new = gnn + jnp.dot(adj_ref[...], xw.astype(jnp.bfloat16),
                            preferred_element_type=jnp.float32)
    gnn_ref[...] = gnn_new

    @pl.when(layer == n_layers - 1)
    def _emit():
        out_ref[:, :LANE] = x1_ref[...]       # lane-aligned, full-width stores
        out_ref[:, LANE:] = gnn_new


def gcn_stack(feat, adj_bf16, w1, b1, wk, bk):
    """feat: (B, M, 128) f32 ; adj_bf16: (B, M, M) bf16 ; padded params."""
    B, M, _ = feat.shape
    n_layers = wk.shape[0]

    flops = (2 * B * M * LANE * LANE
             + 2 * B * n_layers * (M * LANE * LANE + M * M * LANE))
    bytes_accessed = (adj_bf16.size * 2 + feat.size * 4 + B * M * 2 * LANE * 4
                      + (w1.size + b1.size + wk.size + bk.size) * 4)

    return pl.pallas_call(
        _gcn_kernel,
        out_shape=jax.ShapeDtypeStruct((B, M, 2 * LANE), jnp.float32),
        grid_spec=pltpu.PrefetchScalarGridSpec(
            num_scalar_prefetch=0,
            grid=(B, n_layers),
            in_specs=[
                pl.BlockSpec((None, M, LANE), lambda b, l: (b, 0, 0)),     # feat_b
                pl.BlockSpec((None, M, M), lambda b, l: (b, 0, 0)),        # A_b (bf16), reused across layers
                pl.BlockSpec((LANE, LANE), lambda b, l: (0, 0)),           # fc1 W (resident)
                pl.BlockSpec((1, LANE), lambda b, l: (0, 0)),              # fc1 b (resident)
                pl.BlockSpec((None, LANE, LANE), lambda b, l: (l, 0, 0)),  # conv W_l (per layer)
                pl.BlockSpec((None, 1, LANE), lambda b, l: (l, 0, 0)),     # conv b_l (per layer)
            ],
            out_specs=pl.BlockSpec((None, M, 2 * LANE), lambda b, l: (b, 0, 0)),
            scratch_shapes=[pltpu.VMEM((M, LANE), jnp.float32),    # x1 (fc1 output)
                            pltpu.VMEM((M, LANE), jnp.float32)],   # gnn carry
        ),
        compiler_params=pltpu.CompilerParams(
            # dialogue axis shards across TensorCores (v7x megacore); the layer
            # axis is sequential because it carries the gnn scratch state.
            dimension_semantics=("parallel", "arbitrary"),
            vmem_limit_bytes=32 * 1024 * 1024,
        ),
        cost_estimate=pl.CostEstimate(flops=flops, transcendentals=0,
                                      bytes_accessed=bytes_accessed),
    )(feat, adj_bf16, w1, b1, wk, bk)


# ------------------------------ host-side glue --------------------------------
def _norm_adj_block(L, M):
    """Sym-normalized (A + I) for ONE dialogue's [l;a;v] nodes, padded to (M, M).
    (Dialogues never connect, so per-block normalization == whole-graph.)"""
    n = 3 * L
    A = np.zeros((n, n), np.float32)
    nodes = np.arange(n)
    nl_, na_, nv_ = nodes[:L], nodes[L:2 * L], nodes[2 * L:]
    for grp in (nl_, na_, nv_):                           # intra-modal cliques
        for s, d in permutations(grp.tolist(), 2):
            A[d, s] = 1.0
    for j in range(L):                                    # cross-modal triangles
        for s, d in permutations([int(nl_[j]), int(na_[j]), int(nv_[j])], 2):
            A[d, s] = 1.0
    A = A + np.eye(n, dtype=np.float32)                   # self loops
    dinv = 1.0 / np.sqrt(A.sum(axis=1))
    A = (A * dinv[:, None]) * dinv[None, :]
    out = np.zeros((M, M), np.float32)
    out[:n, :n] = A
    return out


def build_batched_inputs(a, v, l, dia_len):
    """Per-dialogue [l;a;v] feature slabs + block-diagonal adjacency blocks,
    zero-padded to (M, 128) / (M, M) with M = round_up(max 3*L_i, 128)."""
    M = _round_up(max(3 * L for L in dia_len), LANE)
    feat_blocks, adj_blocks, off = [], [], 0
    for L in dia_len:
        blk = jnp.concatenate([l[off:off + L], a[off:off + L], v[off:off + L]], 0)
        blk = jnp.pad(blk, ((0, M - 3 * L), (0, LANE - blk.shape[1])))
        feat_blocks.append(blk)
        adj_blocks.append(_norm_adj_block(L, M))
        off += L
    feat = jnp.stack(feat_blocks, 0)                              # (B, M, 128) f32
    adj = jnp.asarray(np.stack(adj_blocks, 0), jnp.bfloat16)      # (B, M, M)  bf16
    return feat, adj


def pad_params(params):
    """Zero-pad every weight to 128 lanes; padded rows/cols stay exactly zero,
    so results in the first 32 columns are unchanged."""
    w1 = jnp.zeros((LANE, LANE), jnp.float32).at[:N_DIM, :NHIDDEN].set(params["fc1_w"])
    b1 = jnp.zeros((1, LANE), jnp.float32).at[:, :NHIDDEN].set(params["fc1_b"])
    wk = jnp.zeros((NUM_GRAPH_LAYERS, LANE, LANE), jnp.float32
                   ).at[:, :NHIDDEN, :NHIDDEN].set(params["conv_w"])
    bk = jnp.zeros((NUM_GRAPH_LAYERS, 1, LANE), jnp.float32
                   ).at[:, :, :NHIDDEN].set(params["conv_b"])
    return w1, b1, wk, bk


def assemble_output(out_batched, dia_len):
    """Un-pad + reverse_features: (N, 6*nhidden) with features [l|a|v] per row."""
    l_p, a_p, v_p = [], [], []
    for b, L in enumerate(dia_len):
        blk = jnp.concatenate([out_batched[b, :3 * L, :NHIDDEN],
                               out_batched[b, :3 * L, LANE:LANE + NHIDDEN]], axis=-1)
        l_p.append(blk[:L])
        a_p.append(blk[L:2 * L])
        v_p.append(blk[2 * L:3 * L])
    return jnp.concatenate([jnp.concatenate(l_p, 0),
                            jnp.concatenate(a_p, 0),
                            jnp.concatenate(v_p, 0)], axis=-1)


def gcn_forward(a, v, l, dia_len, qmask, params):
    # qmask cat + speaker embedding lookup (tiny; plain XLA)
    qm = jnp.concatenate([qmask[:x, i, :] for i, x in enumerate(dia_len)], axis=0)
    spk_emb = jnp.take(params["speaker_emb"], jnp.argmax(qm, axis=-1), axis=0)
    if "t" in SPK_EMBS:
        l = l + spk_emb
    elif "a" in SPK_EMBS:
        a = a + spk_emb
    elif "v" in SPK_EMBS:
        v = v + spk_emb

    feat, adj = build_batched_inputs(a, v, l, dia_len)
    w1, b1, wk, bk = pad_params(params)
    out = gcn_stack(feat, adj, w1, b1, wk, bk)          # (B, M, 256)
    return assemble_output(out, dia_len)                # (N, 6*nhidden)


# -------------------------- pure-JAX reference helpers -------------------------
def _build_features_full(a, v, l, dia_len):
    parts, off = [], 0
    for L in dia_len:
        parts += [l[off:off + L], a[off:off + L], v[off:off + L]]
        off += L
    return jnp.concatenate(parts, 0)


def _build_norm_adj_full(dia_len):
    n = 3 * sum(dia_len)
    A = np.zeros((n, n), np.float32)
    off = 0
    for L in dia_len:
        A[off:off + 3 * L, off:off + 3 * L] = _norm_adj_block(L, 3 * L)
        off += 3 * L
    return jnp.asarray(A)


def _reverse_features_full(dia_len, features):
    l_p, a_p, v_p, off = [], [], [], 0
    for L in dia_len:
        l_p.append(features[off:off + L])
        a_p.append(features[off + L:off + 2 * L])
        v_p.append(features[off + 2 * L:off + 3 * L])
        off += 3 * L
    return jnp.concatenate([jnp.concatenate(l_p, 0),
                            jnp.concatenate(a_p, 0),
                            jnp.concatenate(v_p, 0)], axis=-1)


# --------------------------------- main ---------------------------------------
if __name__ == "__main__":
    key = jax.random.PRNGKey(0)
    ks = jax.random.split(key, 10)

    N = sum(DIA_LEN)                                      # total utterances
    max_len = max(DIA_LEN)
    batch = len(DIA_LEN)

    a = jax.random.normal(ks[0], (N, N_DIM), jnp.float32)
    v = jax.random.normal(ks[1], (N, N_DIM), jnp.float32)
    l = jax.random.normal(ks[2], (N, N_DIM), jnp.float32)
    qmask = jax.random.uniform(ks[3], (max_len, batch, N_SPEAKERS), jnp.float32)

    params = {
        "speaker_emb": 0.1 * jax.random.normal(ks[4], (N_SPEAKERS, N_DIM), jnp.float32),
        "fc1_w": 0.1 * jax.random.normal(ks[5], (N_DIM, NHIDDEN), jnp.float32),
        "fc1_b": 0.1 * jax.random.normal(ks[6], (1, NHIDDEN), jnp.float32),
        "conv_w": 0.1 * jax.random.normal(ks[7], (NUM_GRAPH_LAYERS, NHIDDEN, NHIDDEN), jnp.float32),
        "conv_b": 0.1 * jax.random.normal(ks[8], (NUM_GRAPH_LAYERS, 1, NHIDDEN), jnp.float32),
    }

    out = gcn_forward(a, v, l, DIA_LEN, qmask, params)
    out = jax.block_until_ready(out)
    assert out.shape == (N, 6 * NHIDDEN), out.shape

    # pure-JAX f32 reference (dense full-graph formulation of the same math)
    qm = jnp.concatenate([qmask[:x, i, :] for i, x in enumerate(DIA_LEN)], axis=0)
    l_ref = l + jnp.take(params["speaker_emb"], jnp.argmax(qm, -1), axis=0)
    feat_full = _build_features_full(a, v, l_ref, DIA_LEN)
    adj_full = _build_norm_adj_full(DIA_LEN)
    x1 = feat_full @ params["fc1_w"] + params["fc1_b"]
    gnn = x1
    for kk in range(NUM_GRAPH_LAYERS):
        gnn = gnn + adj_full @ (gnn @ params["conv_w"][kk] + params["conv_b"][kk])
    ref = _reverse_features_full(DIA_LEN, jnp.concatenate([x1, gnn], axis=-1))

    # The kernel streams the adjacency path in bf16 (with f32 accumulation), so
    # compare against the full-precision reference with a bf16-level tolerance.
    np.testing.assert_allclose(np.asarray(out), np.asarray(ref), rtol=2e-2, atol=2e-2)

    print("KERNEL_OK")
</pallas_src>

<mosaic_0001>
module attributes {stable_mosaic.version = 11 : i64} {
  func.func @_gcn_kernel(%arg0: i32, %arg1: i32, %arg2: memref<1x128x128xf32, #tpu.memory_space<vmem>>, %arg3: memref<1x128x128xbf16, #tpu.memory_space<vmem>>, %arg4: memref<128x128xf32, #tpu.memory_space<vmem>>, %arg5: memref<1x128xf32, #tpu.memory_space<vmem>>, %arg6: memref<1x128x128xf32, #tpu.memory_space<vmem>>, %arg7: memref<1x1x128xf32, #tpu.memory_space<vmem>>, %arg8: memref<1x128x256xf32, #tpu.memory_space<vmem>>, %arg9: memref<128x128xf32, #tpu.memory_space<vmem>>, %arg10: memref<128x128xf32, #tpu.memory_space<vmem>>) attributes {dimension_semantics = [#tpu.dimension_semantics<parallel>, #tpu.dimension_semantics<arbitrary>], iteration_bounds = array<i64: 2, 4>, scalar_prefetch = 0 : i64, scratch_operands = 2 : i64, tpu.core_type = #tpu.core_type<tc>, window_params = [{transform_indices = @transform_0, window_bounds = array<i64: 1, 128, 128>}, {transform_indices = @transform_1, window_bounds = array<i64: 1, 128, 128>}, {pipeline_mode = #tpu.pipeline_mode<synchronous>, transform_indices = @transform_2, window_bounds = array<i64: 128, 128>}, {pipeline_mode = #tpu.pipeline_mode<synchronous>, transform_indices = @transform_3, window_bounds = array<i64: 1, 128>}, {transform_indices = @transform_4, window_bounds = array<i64: 1, 128, 128>}, {transform_indices = @transform_5, window_bounds = array<i64: 1, 1, 128>}, {transform_indices = @transform_6, window_bounds = array<i64: 1, 128, 256>}]} {
    %c0_i32 = arith.constant 0 : i32
    %0 = arith.cmpi eq, %arg1, %c0_i32 : i32
    %1 = arith.extui %0 : i1 to i32
    %c0_i32_0 = arith.constant 0 : i32
    %2 = arith.cmpi ne, %1, %c0_i32_0 : i32
    scf.if %2 {
      %c0_15 = arith.constant 0 : index
      %c0_16 = arith.constant 0 : index
      %c0_17 = arith.constant 0 : index
      %20 = vector.load %arg2[%c0_15, %c0_16, %c0_17] : memref<1x128x128xf32, #tpu.memory_space<vmem>>, vector<1x128x128xf32>
      %21 = vector.shape_cast %20 : vector<1x128x128xf32> to vector<128x128xf32>
      %c0_18 = arith.constant 0 : index
      %c0_19 = arith.constant 0 : index
      %22 = vector.load %arg4[%c0_18, %c0_19] : memref<128x128xf32, #tpu.memory_space<vmem>>, vector<128x128xf32>
      %cst_20 = arith.constant dense<0.000000e+00> : vector<128x128xf32>
      %23 = tpu.matmul %21, %22, %cst_20 {dimension_numbers = #tpu.dot_dimension_numbers<[1], [0], [0], [1], [0, 0, 1, 1], [], []>} : vector<128x128xf32>, vector<128x128xf32>, vector<128x128xf32> -> vector<128x128xf32>
      %c0_21 = arith.constant 0 : index
      %c0_22 = arith.constant 0 : index
      %24 = vector.load %arg5[%c0_21, %c0_22] : memref<1x128xf32, #tpu.memory_space<vmem>>, vector<1x128xf32>
      %25 = vector.broadcast %24 : vector<1x128xf32> to vector<128x128xf32>
      %26 = arith.addf %23, %25 : vector<128x128xf32>
      %c0_23 = arith.constant 0 : index
      %c0_24 = arith.constant 0 : index
      %27 = vector.load %arg9[%c0_23, %c0_24] : memref<128x128xf32, #tpu.memory_space<vmem>>, vector<128x128xf32>
      tpu.vector_store %arg9[%c0_23, %c0_24], %26 {strides = array<i32>} : memref<128x128xf32, #tpu.memory_space<vmem>>, vector<128x128xf32>,
      %c0_25 = arith.constant 0 : index
      %c0_26 = arith.constant 0 : index
      %28 = vector.load %arg10[%c0_25, %c0_26] : memref<128x128xf32, #tpu.memory_space<vmem>>, vector<128x128xf32>
      tpu.vector_store %arg10[%c0_25, %c0_26], %26 {strides = array<i32>} : memref<128x128xf32, #tpu.memory_space<vmem>>, vector<128x128xf32>,
    } else {
    }
    %c0 = arith.constant 0 : index
    %c0_1 = arith.constant 0 : index
    %3 = vector.load %arg10[%c0, %c0_1] : memref<128x128xf32, #tpu.memory_space<vmem>>, vector<128x128xf32>
    %c0_2 = arith.constant 0 : index
    %c0_3 = arith.constant 0 : index
    %c0_4 = arith.constant 0 : index
    %4 = vector.load %arg6[%c0_2, %c0_3, %c0_4] : memref<1x128x128xf32, #tpu.memory_space<vmem>>, vector<1x128x128xf32>
    %5 = vector.shape_cast %4 : vector<1x128x128xf32> to vector<128x128xf32>
    %cst = arith.constant dense<0.000000e+00> : vector<128x128xf32>
    %6 = tpu.matmul %3, %5, %cst {dimension_numbers = #tpu.dot_dimension_numbers<[1], [0], [0], [1], [0, 0, 1, 1], [], []>} : vector<128x128xf32>, vector<128x128xf32>, vector<128x128xf32> -> vector<128x128xf32>
    %c0_5 = arith.constant 0 : index
    %c0_6 = arith.constant 0 : index
    %c0_7 = arith.constant 0 : index
    %7 = vector.load %arg7[%c0_5, %c0_6, %c0_7] : memref<1x1x128xf32, #tpu.memory_space<vmem>>, vector<1x1x128xf32>
    %8 = vector.shape_cast %7 : vector<1x1x128xf32> to vector<1x128xf32>
    %9 = vector.broadcast %8 : vector<1x128xf32> to vector<128x128xf32>
    %10 = arith.addf %6, %9 : vector<128x128xf32>
    %c0_8 = arith.constant 0 : index
    %c0_9 = arith.constant 0 : index
    %c0_10 = arith.constant 0 : index
    %11 = vector.load %arg3[%c0_8, %c0_9, %c0_10] : memref<1x128x128xbf16, #tpu.memory_space<vmem>>, vector<1x128x128xbf16>
    %12 = vector.shape_cast %11 : vector<1x128x128xbf16> to vector<128x128xbf16>
    %13 = arith.truncf %10 : vector<128x128xf32> to vector<128x128xbf16>
    %cst_11 = arith.constant dense<0.000000e+00> : vector<128x128xf32>
    %14 = tpu.matmul %12, %13, %cst_11 {dimension_numbers = #tpu.dot_dimension_numbers<[1], [0], [0], [1], [0, 0, 1, 1], [], []>} : vector<128x128xbf16>, vector<128x128xbf16>, vector<128x128xf32> -> vector<128x128xf32>
    %15 = arith.addf %3, %14 : vector<128x128xf32>
    %c0_12 = arith.constant 0 : index
    %c0_13 = arith.constant 0 : index
    %16 = vector.load %arg10[%c0_12, %c0_13] : memref<128x128xf32, #tpu.memory_space<vmem>>, vector<128x128xf32>
    tpu.vector_store %arg10[%c0_12, %c0_13], %15 {strides = array<i32>} : memref<128x128xf32, #tpu.memory_space<vmem>>, vector<128x128xf32>,
    %c3_i32 = arith.constant 3 : i32
    %17 = arith.cmpi eq, %arg1, %c3_i32 : i32
    %18 = arith.extui %17 : i1 to i32
    %c0_i32_14 = arith.constant 0 : i32
    %19 = arith.cmpi ne, %18, %c0_i32_14 : i32
    scf.if %19 {
      %c0_15 = arith.constant 0 : index
      %c0_16 = arith.constant 0 : index
      %20 = vector.load %arg9[%c0_15, %c0_16] : memref<128x128xf32, #tpu.memory_space<vmem>>, vector<128x128xf32>
      %c0_17 = arith.constant 0 : index
      %c0_18 = arith.constant 0 : index
      %c0_19 = arith.constant 0 : index
      %21 = vector.load %arg8[%c0_17, %c0_18, %c0_19] : memref<1x128x256xf32, #tpu.memory_space<vmem>>, vector<1x128x128xf32>
      %22 = vector.shape_cast %21 : vector<1x128x128xf32> to vector<128x128xf32>
      %23 = vector.shape_cast %20 : vector<128x128xf32> to vector<1x128x128xf32>
      tpu.vector_store %arg8[%c0_17, %c0_18, %c0_19], %23 {strides = array<i32>} : memref<1x128x256xf32, #tpu.memory_space<vmem>>, vector<1x128x128xf32>,
      %c0_20 = arith.constant 0 : index
      %c0_21 = arith.constant 0 : index
      %c128 = arith.constant 128 : index
      %24 = vector.load %arg8[%c0_20, %c0_21, %c128] : memref<1x128x256xf32, #tpu.memory_space<vmem>>, vector<1x128x128xf32>
      %25 = vector.shape_cast %24 : vector<1x128x128xf32> to vector<128x128xf32>
      %26 = vector.shape_cast %15 : vector<128x128xf32> to vector<1x128x128xf32>
      tpu.vector_store %arg8[%c0_20, %c0_21, %c128], %26 {strides = array<i32>} : memref<1x128x256xf32, #tpu.memory_space<vmem>>, vector<1x128x128xf32>,
    } else {
    }
    return
  }
  func.func @transform_0(%arg0: i32, %arg1: i32) -> (i32, i32, i32) {
    %c0_i32 = arith.constant 0 : i32
    %c0_i32_0 = arith.constant 0 : i32
    %c0_i32_1 = arith.constant 0 : i32
    return %arg0, %c0_i32, %c0_i32_0 : i32, i32, i32
  }
  func.func @transform_1(%arg0: i32, %arg1: i32) -> (i32, i32, i32) {
    %c0_i32 = arith.constant 0 : i32
    %c0_i32_0 = arith.constant 0 : i32
    %c0_i32_1 = arith.constant 0 : i32
    return %arg0, %c0_i32, %c0_i32_0 : i32, i32, i32
  }
  func.func @transform_2(%arg0: i32, %arg1: i32) -> (i32, i32) {
    %c0_i32 = arith.constant 0 : i32
    %c0_i32_0 = arith.constant 0 : i32
    %c0_i32_1 = arith.constant 0 : i32
    return %c0_i32, %c0_i32_0 : i32, i32
  }
  func.func @transform_3(%arg0: i32, %arg1: i32) -> (i32, i32) {
    %c0_i32 = arith.constant 0 : i32
    %c0_i32_0 = arith.constant 0 : i32
    %c0_i32_1 = arith.constant 0 : i32
    return %c0_i32, %c0_i32_0 : i32, i32
  }
  func.func @transform_4(%arg0: i32, %arg1: i32) -> (i32, i32, i32) {
    %c0_i32 = arith.constant 0 : i32
    %c0_i32_0 = arith.constant 0 : i32
    %c0_i32_1 = arith.constant 0 : i32
    return %arg1, %c0_i32, %c0_i32_0 : i32, i32, i32
  }
  func.func @transform_5(%arg0: i32, %arg1: i32) -> (i32, i32, i32) {
    %c0_i32 = arith.constant 0 : i32
    %c0_i32_0 = arith.constant 0 : i32
    %c0_i32_1 = arith.constant 0 : i32
    return %arg1, %c0_i32, %c0_i32_0 : i32, i32, i32
  }
  func.func @transform_6(%arg0: i32, %arg1: i32) -> (i32, i32, i32) {
    %c0_i32 = arith.constant 0 : i32
    %c0_i32_0 = arith.constant 0 : i32
    %c0_i32_1 = arith.constant 0 : i32
    return %arg0, %c0_i32, %c0_i32_0 : i32, i32, i32
  }
}

</mosaic_0001>

<bundles_post_ra>
// kernel: tpu_custom_call.1
= control target key start
LH: loop header
LB: loop body
LE: loop exit
PB: predicated region body
PF: predicated region fallthrough
CT: control target
= control target key end

     0   :  { %s2385_s0 = inlined_call_operand.hbm [shape: f32[2,128,128], index: 0, kind: input, shape index: {}]   ;;  %s2386_s1 = inlined_call_operand.hbm [shape: bf16[2,128,128], index: 1, kind: input, shape index: {}]   ;;  %s2387_s2 = inlined_call_operand.hbm [shape: f32[128,128], index: 2, kind: input, shape index: {}]   ;;  %s2388_s3 = inlined_call_operand.vmem [shape: f32[1,128], index: 3, kind: input, shape index: {}]   ;;  %s2389_s4 = inlined_call_operand.hbm [shape: f32[4,128,128], index: 4, kind: input, shape index: {}]   ;;  %s2390_s5 = inlined_call_operand.vmem [shape: f32[4,1,128], index: 5, kind: input, shape index: {}]   ;;  %s2391_s6 = inlined_call_operand.hbm [shape: f32[2,128,256], index: 6, kind: output, shape index: {}]  }
   0x1   :  { %2406 = sst [smem:[#allocation24_spill]] %s2385_s0 }
   0x2   :  { %2407 = sst [smem:[#allocation25_spill]] %s2387_s2 }
   0x3   :  { %2408 = sst [smem:[#allocation26_spill]] %s2388_s3 }
   0x4   :  { %2409 = sst [smem:[#allocation27_spill]] %s2390_s5 }
   0x5   :  { %2410 = sst [smem:[#allocation28_spill]] %s2391_s6 }
   0x6   :  { %11 = vsyncpa [#allocation5], 0 }
   0x7   :  { %13 = vsyncpa [#allocation5 + $0x1], 0 }
   0x8   :  { %14 = vsyncpa [#allocation8], 0 }
   0x9   :  { %16 = vsyncpa [#allocation8 + $0x1], 0 }
   0xa   :  { %17 = vsyncpa [#allocation11], 0 }
   0xb   :  { %19 = vsyncpa [#allocation11 + $0x1], 0 }
   0xc   :  { %20 = vsyncpa [#allocation6], 0 }
   0xd   :  { %22 = vsyncpa [#allocation6 + $0x1], 0  ;;  %s1934_s21 = smov 0   ;;  %s1936_s22 = smov 0  }
   0xe   :  { %s1938_s23 = smov 0   ;;  %s1940_s24 = smov 0  }
   0xf   :  { %s1942_s25 = smov 0   ;;  %s1944_s26 = smov 0  }
  0x10   :  { %s1946_s27 = smov 0   ;;  %s1948_s28 = smov 0  }
  0x11   :  { %s1950_s29 = smov 0   ;;  %s1952_s30 = smov 0  }
  0x12   :  { %s1954_s7 = smov 0  }
  0x13 LB: > { %2411 = sst [smem:[#allocation18_spill]] %s1858_s24  ;;  %s1988_s8 = sadd.s32 4294967295, %s1886_s7   ;;  %s1886_s7 = sphi %s1954_s7, %s28_s7   ;;  %s1882_s30 = sphi %s1952_s30, %s2455_s30   ;;  %s1878_s29 = sphi %s1950_s29, %s2454_s29   ;;  %s1874_s28 = sphi %s1948_s28, %s2453_s28   ;;  %s1870_s27 = sphi %s1946_s27, %s2452_s27   ;;  %s1866_s26 = sphi %s1944_s26, %s2451_s26   ;;  %s1862_s25 = sphi %s1942_s25, %s2450_s25   ;;  %s1858_s24 = sphi %s1940_s24, %s2449_s24   ;;  %s1854_s23 = sphi %s1938_s23, %s2448_s23   ;;  %s1850_s22 = sphi %s1936_s22, %s2447_s22   ;;  %s1846_s21 = sphi %s1934_s21, %s2446_s21  }
  0x14   : > { %2412 = sst [smem:[#allocation19_spill]] %s1870_s27  ;;  %s1211_s9 = sadd.s32 4294967294, %s1886_s7  }
  0x15   : > { %2413 = sst [smem:[#allocation20_spill]] %s1874_s28  ;;  %p60_p0 = scmp.ne.s32.totalorder %s1862_s25, %s1858_s24 }
  0x16   : > { %p2401_p1 = scmp.eq.s32.totalorder %s1988_s8, 0  ;;  %p154_p2 = scmp.ne.s32.totalorder %s1850_s22, %s1846_s21 }
  0x17   : > { %p210_p5 = scmp.eq.s32.totalorder %s1211_s9, 7  ;;  %p1212_p7 = scmp.ge.s32.totalorder %s1886_s7, 1 }
  0x18   : > { %p1998_p4 = por %p2401_p1, %p60_p0  ;;  %p2004_p6 = por %p154_p2, %p2401_p1 }
  0x19   : > { %p2009_p8 = por %p210_p5, %p60_p0  ;;  %p217_p9 = scmp.lt.s32.totalorder %s1886_s7, 9 }
  0x1a   : > { %s2415_s11 = scalar_select %p2004_p6, 1, 0 }
  0x1b   : > { %s2417_s12 = scalar_select %p2009_p8, 1, 0 }
  0x1c   : > { %2416 = sst [smem:[#allocation21_spill]] %s2415_s11  ;;  %p2014_p10 = pnand %p1212_p7, %p217_p9 }
  0x1d   : > { %2418 = sst [smem:[#allocation22_spill]] %s2417_s12  ;;  %s1888_s14 = smov [#allocation9]  }
  0x1e   : > { %s229_s15 = sshll.u32 %s1888_s14, 4  ;;  %p1519_p11 = pneg %p2014_p10  ;;  %s230_s15 = int_to_ptr.vmem [resolvable:$true] %s229_s15 }
  0x1f   : > { %s1655_s18 = scalar_lea.vmem %s230_s15, 2048  ;;  %p1663_p7 = scmp.lt.s32.totalorder %s230_s15, %s230_s15 }
  0x20   : > { %p2022_p12 = pnand %p1519_p11, %p2401_p1  ;;  %p1656_p0 = scmp.ne.s32.totalorder %s230_s15, %s1655_s18 }
  0x21   : > { %p1664_p9 = scmp.lt.s32.totalorder %s1655_s18, %s1655_s18 }
  0x22   : > { %p1646_p13 = pneg %p2022_p12 }
  0x23   : > { %p1665_p3 = por %p1664_p9, %p1663_p7 }
  0x24   : > { %p1658_p2 = pnand %p1656_p0, %p1646_p13 }
  0x26   : > { %p1659_p5 = pneg %p1658_p2 }
  0x28   : > { %p1666_p8 = pnand %p1665_p3, %p1659_p5 }
  0x2a   : > { %1669 = shalt.err (!%p1666_p8)
}
  0x2b   : > { %s2393_s19 = smov 128   ;;  %s2395_s20 = smov 8  }
  0x2c   : > { %s2421_s2 = sld [smem:[#allocation25_spill]]  ;;  %p54_p3 = scmp.ne.s32.totalorder %s1866_s26, %s1862_s25 }
  0x2d   : > { %p55_p8 = scmp.eq.s32.totalorder %s1886_s7, 0  ;;  %p2402_p11 = scmp.lt.s32.totalorder %s1886_s7, 8 }
  0x2e   : > { %s2042_s14 = sand.u32 1, %s1866_s26   ;;  %p2422_p0 = scmp.eq.s32.totalorder %s1988_s8, 7 }
  0x2f   : > { %p56_p13 = por %p55_p8, %p54_p3  ;;  %s1215_s18 = sshll.u32 %s2042_s14, 7 }
  0x30   : > { %p2048_p2 = por %p2422_p0, %p54_p3  ;;  %s1247_s17 = sshll.u32 %s1882_s30, 11 }
  0x31   : > { %s2425_s0 = sld [smem:[#allocation24_spill]]  ;;  %s250_s9 = scalar_lea.vmem [#allocation4], %s1215_s18 }
  0x32   : > { %1522 = dma.hbm_to_vmem [thread:$0]  (!%p2022_p12), %s2421_s2, 2048, %s230_s15, [#allocation8], %s2393_s19, %s2393_s19, %s2395_s20  }
  0x33   : > { %s2423_s16 = scalar_select %p2048_p2, 1, 0 }
  0x34   : > { %s257_s19 = sshll.u32 %s250_s9, 4  ;;  %p2059_p12 = pnand %p2402_p11, %p56_p13  ;;  %s258_s19 = int_to_ptr.vmem [resolvable:$true] %s257_s19 }
  0x35   : > { %2424 = sst [smem:[#allocation23_spill]] %s2423_s16  ;;  %s267_s2 = sand.u32 1, %s1886_s7  }
  0x36   : > { %s1218_s24 = sshll.u32 %s2042_s14, 6  ;;  %s247_s6 = scalar_lea.sflag [#allocation5], %s2042_s14 }
  0x37   : > { %s256_s15 = scalar_lea.hbm %s2425_s0, %s1247_s17  ;;  %p1672_p5 = pneg %p2059_p12 }
  0x38   : > { %s1683_s16 = scalar_lea.vmem %s258_s19, 2048  ;;  %s1891_s12 = smov [#allocation4]  }
  0x39   : > { %p1684_p7 = scmp.ne.s32.totalorder %s258_s19, %s1683_s16  ;;  %s1688_s17 = sshll.u32 %s1891_s12, 4  ;;  %s1689_s17 = int_to_ptr.vmem [resolvable:$false] %s1688_s17 }
  0x3a   : > { %s1690_s18 = scalar_lea.vmem %s1689_s17, 4096  ;;  %p1691_p13 = scmp.lt.s32.totalorder %s258_s19, %s1689_s17 }
  0x3b   : > { %p1686_p9 = pnand %p1684_p7, %p1672_p5  ;;  %p1692_p0 = scmp.lt.s32.totalorder %s1690_s18, %s1683_s16 }
  0x3d   : > { %p1687_p3 = pneg %p1686_p9  ;;  %p1693_p1 = por %p1692_p0, %p1691_p13 }
  0x3f   : > { %p1694_p11 = pnand %p1693_p1, %p1687_p3 }
  0x41   : > { %1697 = shalt.err (!%p1694_p11)
}
  0x42   : > { %s2427_s14 = smov 8   ;;  %s2428_s21 = smov 128  }
  0x43   : > { %1526 = dma.hbm_to_vmem [thread:$0]  (!%p2059_p12), %s256_s15, 2048, %s258_s19, %s247_s6, %s2428_s21, %s2428_s21, %s2427_s14  }
  0x44   : > { %s1248_s9 = sshll.u32 %s1882_s30, 10  ;;  %s271_s3 = scalar_lea.vmem [#allocation7], %s1218_s24 }
  0x45   : > { %s277_s12 = scalar_lea.hbm %s2386_s1, %s1248_s9  ;;  %s278_s5 = sshll.u32 %s271_s3, 4  ;;  %s279_s5 = int_to_ptr.vmem [resolvable:$true] %s278_s5 }
  0x46   : > { %s268_s16 = scalar_lea.sflag [#allocation8], %s267_s2  ;;  %s1711_s17 = scalar_lea.vmem %s279_s5, 1024 }
  0x47   : > { %p1712_p1 = scmp.ne.s32.totalorder %s279_s5, %s1711_s17  ;;  %s1892_s18 = smov [#allocation7]  }
  0x48   : > { %s1716_s27 = sshll.u32 %s1892_s18, 4  ;;  %s1717_s27 = int_to_ptr.vmem [resolvable:$false] %s1716_s27 }
  0x49   : > { %p1714_p11 = pnand %p1712_p1, %p1672_p5  ;;  %s1718_s11 = scalar_lea.vmem %s1717_s27, 2048 }
  0x4a   : > { %p1719_p9 = scmp.lt.s32.totalorder %s279_s5, %s1717_s27  ;;  %p1720_p3 = scmp.lt.s32.totalorder %s1718_s11, %s1711_s17 }
  0x4b   : > { %p1715_p7 = pneg %p1714_p11 }
  0x4c   : > { %p1721_p13 = por %p1720_p3, %p1719_p9 }
  0x4e   : > { %p1722_p0 = pnand %p1721_p13, %p1715_p7 }
  0x50   : > { %1725 = shalt.err (!%p1722_p0)
}
  0x51   : > { %s1893_s0 = smov 64   ;;  %s1894_s2 = smov 4  }
  0x52   : > { %1529 = dma.hbm_to_vmem [thread:$0]  (!%p2059_p12), %s277_s12, 1024, %s279_s5, %s268_s16, %s1893_s0, %s1893_s0, %s1894_s2  }
  0x53   : > { %s40_s3 = sadd.s32 1, %s1882_s30  ;;  %s37_s6 = sadd.s32 1, %s1878_s29 }
  0x54   : > { %s141_s24 = sadd.s32 1, %s1854_s23  ;;  %p38_p5 = scmp.ge.s32.totalorder %s37_s6, 4 }
  0x55   : > { %p148_p1 = scmp.ne.s32.totalorder %s1854_s23, %s1850_s22  ;;  %s288_s27 = sand.u32 1, %s1854_s23  }
  0x56   : > { %s1249_s28 = sshll.u32 %s1878_s29, 11  ;;  %s2457_s6 = smov (%p38_p5, %s37_s6), 0 }
  0x57   : > { %s2459_s3 = smov (!%p38_p5, %s40_s3), %s1882_s30  ;;  %s138_s11 = ssub.s32 %s1878_s29, %s2457_s6 }
  0x58   : > { %p150_p11 = por %p148_p1, %p55_p8  ;;  %p42_p12 = scmp.ge.s32.totalorder %s2459_s3, 2 }
  0x59   : > { %p139_p7 = scmp.eq.s32.totalorder %s138_s11, 0  ;;  %s1221_s5 = sshll.u32 %s288_s27, 7 }
  0x5a   : > { %s2461_s3 = smov (%p42_p12, %s2459_s3), 0  ;;  %s298_s12 = scalar_lea.hbm %s2389_s4, %s1249_s28 }
  0x5b   : > { %s2102_s19 = scalar_select %p139_p7, %s1854_s23, %s141_s24  }
  0x5c   : > { %s44_s20 = ssub.s32 %s1882_s30, %s2461_s3  ;;  %s292_s16 = scalar_lea.vmem [#allocation10], %s1221_s5 }
  0x5d   : > { %p45_p9 = scmp.eq.s32.totalorder %s44_s20, 0  ;;  %s299_s17 = sshll.u32 %s292_s16, 4  ;;  %s300_s17 = int_to_ptr.vmem [resolvable:$true] %s299_s17 }
  0x5e   : > { %p2429_p3 = scmp.lt.s32.totalorder %s1886_s7, 8  ;;  %s2431_s0 = sadd.s32 1, %s1866_s26 }
  0x5f   : > { %s2118_s2 = scalar_select %p45_p9, %s1866_s26, %s2431_s0  }
  0x60   : > { %p2111_p13 = pnand %p2429_p3, %p150_p11  ;;  %s289_s24 = scalar_lea.sflag [#allocation11], %s288_s27 }
  0x61   : > { %s1739_s11 = scalar_lea.vmem %s300_s17, 2048  ;;  %s1895_s28 = smov [#allocation10]  }
  0x62   : > { %p1728_p8 = pneg %p2111_p13  ;;  %p1740_p0 = scmp.ne.s32.totalorder %s300_s17, %s1739_s11 }
  0x63   : > { %s1744_s5 = sshll.u32 %s1895_s28, 4  ;;  %s1745_s5 = int_to_ptr.vmem [resolvable:$false] %s1744_s5 }
  0x64   : > { %p1742_p5 = pnand %p1740_p0, %p1728_p8  ;;  %s1746_s20 = scalar_lea.vmem %s1745_s5, 4096 }
  0x65   : > { %p1747_p11 = scmp.lt.s32.totalorder %s300_s17, %s1745_s5  ;;  %p1748_p12 = scmp.lt.s32.totalorder %s1746_s20, %s1739_s11 }
  0x66   : > { %p1743_p1 = pneg %p1742_p5 }
  0x67   : > { %p1749_p7 = por %p1748_p12, %p1747_p11 }
  0x69   : > { %p1750_p3 = pnand %p1749_p7, %p1743_p1 }
  0x6b   : > { %1753 = shalt.err (!%p1750_p3)
}
  0x6c   : > { %1532 = dma.hbm_to_vmem [thread:$0]  (!%p2111_p13), %s298_s12, 2048, %s300_s17, %s289_s24, %s2428_s21, %s2428_s21, %s2427_s14  }
  0x6d   : > { %317 = sbr.rel (%p2014_p10) target bundleno = 944 (0x3b0), region = 44  ;;  %s2130_s27 = sand.u32 (!%p2014_p10), 1, %s1862_s25  }
  0x6e   : > { %s1225_s15 = sshll.u32 (!%p2014_p10), %s2130_s27, 7  ;;  %s320_s9 = scalar_lea.sflag (!%p2014_p10), [#allocation5], %s2130_s27 }
  0x6f   : > { %s2134_s16 = scalar_lea.vmem (!%p2014_p10), [#allocation4], %s1225_s15 }
  0x72   : > { %1825 = dma.done.wait (%p1998_p4), %s320_s9, 2048  }
  0x73   : > { %1827 = vsyncadd (%p1998_p4), %s320_s9, 4294965248  ;;  %s328_s13 = sand.u32 1, %s1988_s8   ;;  %s1226_s14 = sshll.u32 %s2130_s27, 6 }
  0x74   : > { %s329_s21 = scalar_lea.sflag [#allocation8], %s328_s13  ;;  %s2142_s12 = scalar_lea.vmem [#allocation7], %s1226_s14 }
  0x75   : > { %1829 = dma.done.wait (%p1998_p4), %s329_s21, 1024  }
  0x76   : > { %1831 = vsyncadd (%p1998_p4), %s329_s21, 4294966272  ;;  %p2432_p10 = scmp.eq.s32.totalorder %s1988_s8, 0 }
  0x78   : > { %1833 = dma.done.wait (%p2432_p10), [#allocation8], 2048   ;;  %p2433_p9 = pmov %p2432_p10 }
  0x79   : > { %s341_s18 = sand.u32 1, %s1850_s22  }
  0x7a   : > { %1835 = vsyncadd (%p2433_p9), [#allocation8], 4294965248  ;;  %s1228_s0 = sshll.u32 %s341_s18, 7  ;;  %s342_s24 = scalar_lea.sflag [#allocation11], %s341_s18 }
  0x7b   : > { %s2153_s11 = scalar_lea.vmem [#allocation10], %s1228_s0 }
  0x7c   : > { %1837 = dma.done.wait (%p2004_p6), %s342_s24, 2048  }
  0x7d   : > { %1839 = vsyncadd (%p2004_p6), %s342_s24, 4294965248  ;;  %s2435_s10 = sld [smem:[#allocation19_spill]]  ;;  %s1229_s28 = sshll.u32 %s2130_s27, 8 }
  0x7e   : > { %s2436_s15 = sld [smem:[#allocation27_spill]]  ;;  %s2168_s13 = scalar_lea.vmem [#allocation12], %s1229_s28 }
  0x83   : > { %p387_p4 = scmp.lt.s32.totalorder %s2435_s10, 3  ;;  %p1230_p13 = scmp.ne.s32.totalorder %s2435_s10, 0 }
  0x84   : > { %s2437_s17 = sld [smem:[#allocation26_spill]] (!%p1230_p13) }
  0x85   : > { %s2162_s5 = scalar_select %p387_p4, %s2435_s10, 3 }
  0x86   : > { %394 = sbr.rel (%p1230_p13) target bundleno = 384 (0x180), region = 64 }
  0x87   : > { %s389_s9 = scalar_lea.vmem %s2436_s15, %s2162_s5 }
  0x8b   : > { %v426_v0 = vld [vmem:[#allocation9 + $0x78] sm:$0xff]  ;;  %v425_v1 = vld [vmem:[#allocation9 + $0x70] sm:$0xff]  ;;  %v424_v2 = vld [vmem:[#allocation9 + $0x68] sm:$0xff] }
  0x8c   : > { %1331 = vmatprep.subr.mxu0 %v426_v0  ;;  %1475 = vmatprep.subr.mxu1 %v426_v0  ;;  %v423_v3 = vld [vmem:[#allocation9 + $0x60] sm:$0xff]  ;;  %v422_v4 = vld [vmem:[#allocation9 + $0x58] sm:$0xff]  ;;  %v421_v5 = vld [vmem:[#allocation9 + $0x50] sm:$0xff] }
  0x8d   : > { %1332 = vmatpush3.msra.mxu0 %v426_v0  ;;  %1491 = vmatpush3.msra.mxu1 %v426_v0  ;;  %v420_v6 = vld [vmem:[#allocation9 + $0x48] sm:$0xff]  ;;  %v419_v7 = vld [vmem:[#allocation9 + $0x40] sm:$0xff]  ;;  %v418_v8 = vld [vmem:[#allocation9 + $0x38] sm:$0xff] }
  0x8e   : > { %1333 = vmatprep.subr.mxu0 %v425_v1  ;;  %1476 = vmatprep.subr.mxu1 %v425_v1  ;;  %v417_v9 = vld [vmem:[#allocation9 + $0x30] sm:$0xff]  ;;  %v416_v10 = vld [vmem:[#allocation9 + $0x28] sm:$0xff]  ;;  %v415_v11 = vld [vmem:[#allocation9 + $0x20] sm:$0xff] }
  0x8f   : > { %1334 = vmatpush3.msra.mxu0 %v425_v1  ;;  %1492 = vmatpush3.msra.mxu1 %v425_v1  ;;  %v414_v12 = vld [vmem:[#allocation9 + $0x18] sm:$0xff]  ;;  %v413_v13 = vld [vmem:[#allocation9 + $0x10] sm:$0xff]  ;;  %v412_v14 = vld [vmem:[#allocation9 + $0x8] sm:$0xff] }
  0x90   : > { %1335 = vmatprep.subr.mxu0 %v424_v2  ;;  %1477 = vmatprep.subr.mxu1 %v424_v2  ;;  %v411_v15 = vld [vmem:[#allocation9] sm:$0xff]  ;;  %v396_v18 = vld [vmem:[%s2134_s16 + $0x8] sm:$0xff]  ;;  %v397_v20 = vld [vmem:[%s2134_s16 + $0x10] sm:$0xff] }
  0x91   : > { %1336 = vmatpush3.msra.mxu0 %v424_v2  ;;  %1493 = vmatpush3.msra.mxu1 %v424_v2  ;;  %v395_v16 = vld [vmem:[%s2134_s16] sm:$0xff]  ;;  %v404_v19 = vld [vmem:[%s2134_s16 + $0x48] sm:$0xff]  ;;  %v405_v21 = vld [vmem:[%s2134_s16 + $0x50] sm:$0xff] }
  0x92   : > { %1337 = vmatprep.subr.mxu0 %v423_v3  ;;  %1478 = vmatprep.subr.mxu1 %v423_v3  ;;  %v403_v17 = vld [vmem:[%s2134_s16 + $0x40] sm:$0xff]  ;;  %v398_v22 = vld [vmem:[%s2134_s16 + $0x18] sm:$0xff]  ;;  %v400_v26 = vld [vmem:[%s2134_s16 + $0x28] sm:$0xff] }
  0x93   : > { %1338 = vmatpush3.msra.mxu0 %v423_v3  ;;  %1494 = vmatpush3.msra.mxu1 %v423_v3  ;;  %v406_v23 = vld [vmem:[%s2134_s16 + $0x58] sm:$0xff]  ;;  %v399_v24 = vld [vmem:[%s2134_s16 + $0x20] sm:$0xff]  ;;  %v408_v27 = vld [vmem:[%s2134_s16 + $0x68] sm:$0xff] }
  0x94   : > { %1339 = vmatprep.subr.mxu0 %v422_v4  ;;  %1479 = vmatprep.subr.mxu1 %v422_v4  ;;  %v407_v25 = vld [vmem:[%s2134_s16 + $0x60] sm:$0xff]  ;;  %v401_v28 = vld [vmem:[%s2134_s16 + $0x30] sm:$0xff]  ;;  %v402_v30 = vld [vmem:[%s2134_s16 + $0x38] sm:$0xff] }
  0x95   : > { %1340 = vmatpush3.msra.mxu0 %v422_v4  ;;  %1495 = vmatpush3.msra.mxu1 %v422_v4  ;;  %v409_v29 = vld [vmem:[%s2134_s16 + $0x70] sm:$0xff]  ;;  %v410_v31 = vld [vmem:[%s2134_s16 + $0x78] sm:$0xff]  ;;  %v1231_v32 = vld [vmem:[%s2437_s17] ss:$0 sm:$0xff] }
  0x96   : > { %1341 = vmatprep.subr.mxu0 %v421_v5  ;;  %1480 = vmatprep.subr.mxu1 %v421_v5 }
  0x97   : > { %1342 = vmatpush3.msra.mxu0 %v421_v5  ;;  %1496 = vmatpush3.msra.mxu1 %v421_v5 }
  0x98   : > { %1343 = vmatprep.subr.mxu0 %v420_v6  ;;  %1481 = vmatprep.subr.mxu1 %v420_v6 }
  0x99   : > { %1344 = vmatpush3.msra.mxu0 %v420_v6  ;;  %1497 = vmatpush3.msra.mxu1 %v420_v6 }
  0x9a   : > { %1345 = vmatprep.subr.mxu0 %v419_v7  ;;  %1482 = vmatprep.subr.mxu1 %v419_v7 }
  0x9b   : > { %1346 = vmatpush3.msra.mxu0 %v419_v7  ;;  %1498 = vmatpush3.msra.mxu1 %v419_v7 }
  0x9c   : > { %1347 = vmatprep.subr.mxu0 %v418_v8  ;;  %1483 = vmatprep.subr.mxu1 %v418_v8 }
  0x9d   : > { %1348 = vmatpush3.msra.mxu0 %v418_v8  ;;  %1499 = vmatpush3.msra.mxu1 %v418_v8 }
  0x9e   : > { %1349 = vmatprep.subr.mxu0 %v417_v9  ;;  %1484 = vmatprep.subr.mxu1 %v417_v9 }
  0x9f   : > { %1350 = vmatpush3.msra.mxu0 %v417_v9  ;;  %1500 = vmatpush3.msra.mxu1 %v417_v9 }
  0xa0   : > { %1351 = vmatprep.subr.mxu0 %v416_v10  ;;  %1485 = vmatprep.subr.mxu1 %v416_v10 }
  0xa1   : > { %1352 = vmatpush3.msra.mxu0 %v416_v10  ;;  %1501 = vmatpush3.msra.mxu1 %v416_v10 }
  0xa2   : > { %1353 = vmatprep.subr.mxu0 %v415_v11  ;;  %1486 = vmatprep.subr.mxu1 %v415_v11 }
  0xa3   : > { %1354 = vmatpush3.msra.mxu0 %v415_v11  ;;  %1502 = vmatpush3.msra.mxu1 %v415_v11 }
  0xa4   : > { %1355 = vmatprep.subr.mxu0 %v414_v12  ;;  %1487 = vmatprep.subr.mxu1 %v414_v12 }
  0xa5   : > { %1356 = vmatpush3.msra.mxu0 %v414_v12  ;;  %1503 = vmatpush3.msra.mxu1 %v414_v12 }
  0xa6   : > { %1357 = vmatprep.subr.mxu0 %v413_v13  ;;  %1488 = vmatprep.subr.mxu1 %v413_v13 }
  0xa7   : > { %1358 = vmatpush3.msra.mxu0 %v413_v13  ;;  %1504 = vmatpush3.msra.mxu1 %v413_v13 }
  0xa8   : > { %1359 = vmatprep.subr.mxu0 %v412_v14  ;;  %1489 = vmatprep.subr.mxu1 %v412_v14 }
  0xa9   : > { %1360 = vmatpush3.msra.mxu0 %v412_v14  ;;  %1505 = vmatpush3.msra.mxu1 %v412_v14 }
  0xaa   : > { %1361 = vmatprep.subr.mxu0 %v411_v15  ;;  %1490 = vmatprep.subr.mxu1 %v411_v15 }
  0xab   : > { %1362 = vmatpush3.msra.mxu0 %v411_v15  ;;  %1506 = vmatpush3.msra.mxu1 %v411_v15 }
  0xac   : > { %1363 = vmatprep.mubr.f32.mxu0 %v395_v16  ;;  %1375 = vmatprep.mubr.f32.mxu1 %v403_v17 }
  0xad   : > { %1364 = vmatmul.mubr.f32.vlgmr.msra.gmra.mxu0 %v396_v18  ;;  %1376 = vmatmul.mubr.f32.vlgmr.msra.gmra.mxu1 %v404_v19 }
  0xae   : > { %1366 = vmatprep.mubr.f32.mxu0 %v397_v20  ;;  %1378 = vmatprep.mubr.f32.mxu1 %v405_v21 }
  0xb1   : > { %1367 = vmatmul.mubr.f32.gmra.mxu0 %v398_v22  ;;  %1379 = vmatmul.mubr.f32.gmra.mxu1 %v406_v23 }
  0xb2   : > { %1369 = vmatprep.mubr.f32.mxu0 %v399_v24  ;;  %1381 = vmatprep.mubr.f32.mxu1 %v407_v25 }
  0xb5   : > { %1370 = vmatmul.mubr.f32.gmra.mxu0 %v400_v26  ;;  %1382 = vmatmul.mubr.f32.gmra.mxu1 %v408_v27 }
  0xb6   : > { %1372 = vmatprep.mubr.f32.mxu0 %v401_v28  ;;  %1384 = vmatprep.mubr.f32.mxu1 %v409_v29 }
  0xb9   : > { %1373 = vmatmul.mubr.f32.gmra.mxu0 %v402_v30  ;;  %1385 = vmatmul.mubr.f32.gmra.mxu1 %v410_v31 }
 0x16d   : > { %v1365_v33 = vpop.f32.mrf.mxu0  ;;  %v1377_v34 = vpop.f32.mrf.mxu1 }
 0x16e   : > { %v506_v35 = vadd.f32 %v1365_v33, %v1231_v32  ;;  %v546_v36 = vadd.f32 %v1377_v34, %v1231_v32 }
 0x16f   : > { %v500_v37 = vpop.f32.mrf.mxu0  ;;  %v540_v38 = vpop.f32.mrf.mxu1 }
 0x170   : > { %580 = vst [vmem:[#allocation2] sm:$0xff] %v506_v35  ;;  %596 = vst [vmem:[#allocation3 + $0x68] sm:$0xff] %v506_v35  ;;  %v501_v39 = vadd.f32 %v1231_v32, %v500_v37  ;;  %v541_v40 = vadd.f32 %v1231_v32, %v540_v38 }
 0x171   : > { %588 = vst [vmem:[#allocation2 + $0x20] sm:$0xff] %v546_v36  ;;  %604 = vst [vmem:[#allocation3 + $0x78] sm:$0xff] %v546_v36  ;;  %v1368_v41 = vpop.f32.mrf.mxu0  ;;  %v1380_v42 = vpop.f32.mrf.mxu1 }
 0x172   : > { %579 = vst [vmem:[#allocation2 + $0x30] sm:$0xff] %v501_v39  ;;  %595 = vst [vmem:[#allocation3 + $0x28] sm:$0xff] %v501_v39  ;;  %v516_v43 = vadd.f32 %v1368_v41, %v1231_v32  ;;  %v556_v44 = vadd.f32 %v1380_v42, %v1231_v32 }
 0x173   : > { %587 = vst [vmem:[#allocation2 + $0x40] sm:$0xff] %v541_v40  ;;  %603 = vst [vmem:[#allocation3 + $0x20] sm:$0xff] %v541_v40  ;;  %v510_v45 = vpop.f32.mrf.mxu0  ;;  %v550_v46 = vpop.f32.mrf.mxu1 }
 0x174   : > { %582 = vst [vmem:[#allocation2 + $0x18] sm:$0xff] %v516_v43  ;;  %598 = vst [vmem:[#allocation3 + $0x40] sm:$0xff] %v516_v43  ;;  %v511_v47 = vadd.f32 %v1231_v32, %v510_v45  ;;  %v551_v48 = vadd.f32 %v1231_v32, %v550_v46 }
 0x175   : > { %590 = vst [vmem:[#allocation2 + $0x38] sm:$0xff] %v556_v44  ;;  %606 = vst [vmem:[#allocation3 + $0x58] sm:$0xff] %v556_v44  ;;  %v1371_v49 = vpop.f32.mrf.mxu0  ;;  %v1383_v50 = vpop.f32.mrf.mxu1 }
 0x176   : > { %581 = vst [vmem:[#allocation2 + $0x58] sm:$0xff] %v511_v47  ;;  %597 = vst [vmem:[#allocation3 + $0x10] sm:$0xff] %v511_v47  ;;  %v526_v51 = vadd.f32 %v1371_v49, %v1231_v32  ;;  %v566_v52 = vadd.f32 %v1383_v50, %v1231_v32 }
 0x177   : > { %589 = vst [vmem:[#allocation2 + $0x10] sm:$0xff] %v551_v48  ;;  %605 = vst [vmem:[#allocation3 + $0x18] sm:$0xff] %v551_v48  ;;  %v520_v53 = vpop.f32.mrf.mxu0  ;;  %v560_v54 = vpop.f32.mrf.mxu1 }
 0x178   : > { %584 = vst [vmem:[#allocation2 + $0x68] sm:$0xff] %v526_v51  ;;  %600 = vst [vmem:[#allocation3 + $0x30] sm:$0xff] %v526_v51  ;;  %v521_v55 = vadd.f32 %v1231_v32, %v520_v53  ;;  %v561_v56 = vadd.f32 %v1231_v32, %v560_v54 }
 0x179   : > { %592 = vst [vmem:[#allocation2 + $0x70] sm:$0xff] %v566_v52  ;;  %608 = vst [vmem:[#allocation3 + $0x8] sm:$0xff] %v566_v52  ;;  %v1374_v57 = vpop.f32.mrf.mxu0  ;;  %v1386_v58 = vpop.f32.mrf.mxu1 }
 0x17a   : > { %583 = vst [vmem:[#allocation2 + $0x50] sm:$0xff] %v521_v55  ;;  %599 = vst [vmem:[#allocation3 + $0x48] sm:$0xff] %v521_v55  ;;  %v536_v59 = vadd.f32 %v1374_v57, %v1231_v32  ;;  %v576_v60 = vadd.f32 %v1386_v58, %v1231_v32 }
 0x17b   : > { %591 = vst [vmem:[#allocation2 + $0x60] sm:$0xff] %v561_v56  ;;  %607 = vst [vmem:[#allocation3] sm:$0xff] %v561_v56  ;;  %v530_v61 = vpop.f32.mrf.mxu0  ;;  %v570_v62 = vpop.f32.mrf.mxu1 }
 0x17c   : > { %586 = vst [vmem:[#allocation2 + $0x48] sm:$0xff] %v536_v59  ;;  %602 = vst [vmem:[#allocation3 + $0x38] sm:$0xff] %v536_v59  ;;  %v531_v63 = vadd.f32 %v1231_v32, %v530_v61  ;;  %v571_v0 = vadd.f32 %v1231_v32, %v570_v62 }
 0x17d   : > { %594 = vst [vmem:[#allocation2 + $0x28] sm:$0xff] %v576_v60  ;;  %610 = vst [vmem:[#allocation3 + $0x50] sm:$0xff] %v576_v60 }
 0x17e   : > { %585 = vst [vmem:[#allocation2 + $0x8] sm:$0xff] %v531_v63  ;;  %601 = vst [vmem:[#allocation3 + $0x70] sm:$0xff] %v531_v63 }
 0x17f   : > { %593 = vst [vmem:[#allocation2 + $0x78] sm:$0xff] %v571_v0  ;;  %609 = vst [vmem:[#allocation3 + $0x60] sm:$0xff] %v571_v0 }
 0x180 PF: > { %v642_v1 = vld [vmem:[%s2153_s11 + $0x78] sm:$0xff]  ;;  %v641_v2 = vld [vmem:[%s2153_s11 + $0x70] sm:$0xff]  ;;  %v640_v3 = vld [vmem:[%s2153_s11 + $0x68] sm:$0xff] }
 0x181   : > { %1387 = vmatprep.subr.mxu0 %v642_v1  ;;  %v639_v4 = vld [vmem:[%s2153_s11 + $0x60] sm:$0xff]  ;;  %v2194_v5 = vld [vmem:[#allocation3 + $0x28] sm:$0xff]  ;;  %v638_v6 = vld [vmem:[%s2153_s11 + $0x58] sm:$0xff] }
 0x182   : > { %1388 = vmatpush3.msra.mxu0 %v642_v1  ;;  %1419 = vmatprep.mubr.f32.mxu0 %v2194_v5  ;;  %v637_v7 = vld [vmem:[%s2153_s11 + $0x50] sm:$0xff]  ;;  %v636_v8 = vld [vmem:[%s2153_s11 + $0x48] sm:$0xff]  ;;  %v635_v9 = vld [vmem:[%s2153_s11 + $0x40] sm:$0xff] }
 0x183   : > { %1389 = vmatprep.subr.mxu0 %v641_v2  ;;  %v634_v10 = vld [vmem:[%s2153_s11 + $0x38] sm:$0xff]  ;;  %v633_v11 = vld [vmem:[%s2153_s11 + $0x30] sm:$0xff]  ;;  %v632_v12 = vld [vmem:[%s2153_s11 + $0x28] sm:$0xff] }
 0x184   : > { %1390 = vmatpush3.msra.mxu0 %v641_v2  ;;  %v631_v13 = vld [vmem:[%s2153_s11 + $0x20] sm:$0xff]  ;;  %v630_v14 = vld [vmem:[%s2153_s11 + $0x18] sm:$0xff]  ;;  %v629_v15 = vld [vmem:[%s2153_s11 + $0x10] sm:$0xff] }
 0x185   : > { %1391 = vmatprep.subr.mxu0 %v640_v3  ;;  %v628_v16 = vld [vmem:[%s2153_s11 + $0x8] sm:$0xff]  ;;  %v627_v17 = vld [vmem:[%s2153_s11] sm:$0xff]  ;;  %v2211_v19 = vld [vmem:[#allocation3 + $0x10] sm:$0xff] }
 0x186   : > { %1392 = vmatpush3.msra.mxu0 %v640_v3  ;;  %v2209_v18 = vld [vmem:[#allocation3 + $0x68] sm:$0xff]  ;;  %v2215_v20 = vld [vmem:[#allocation3 + $0x40] sm:$0xff]  ;;  %v2221_v22 = vld [vmem:[#allocation3 + $0x30] sm:$0xff] }
 0x187   : > { %1393 = vmatprep.subr.mxu0 %v639_v4  ;;  %v2217_v21 = vld [vmem:[#allocation3 + $0x48] sm:$0xff]  ;;  %v2223_v23 = vld [vmem:[#allocation3 + $0x70] sm:$0xff]  ;;  %v2227_v24 = vld [vmem:[#allocation3 + $0x38] sm:$0xff] }
 0x188   : > { %1394 = vmatpush3.msra.mxu0 %v639_v4  ;;  %v2229_v25 = vld [vmem:[#allocation3 + $0x20] sm:$0xff]  ;;  %v2233_v26 = vld [vmem:[#allocation3 + $0x78] sm:$0xff]  ;;  %v2245_v30 = vld [vmem:[#allocation3 + $0x8] sm:$0xff] }
 0x189   : > { %1395 = vmatprep.subr.mxu0 %v638_v6  ;;  %v2235_v27 = vld [vmem:[#allocation3 + $0x18] sm:$0xff]  ;;  %v2241_v29 = vld [vmem:[#allocation3] sm:$0xff]  ;;  %v2251_v32 = vld [vmem:[#allocation3 + $0x50] sm:$0xff] }
 0x18a   : > { %1396 = vmatpush3.msra.mxu0 %v638_v6  ;;  %v2239_v28 = vld [vmem:[#allocation3 + $0x58] sm:$0xff]  ;;  %v2247_v31 = vld [vmem:[#allocation3 + $0x60] sm:$0xff] }
 0x18b   : > { %1397 = vmatprep.subr.mxu0 %v637_v7  ;;  %v1636_v33 = vld [vmem:[%s2142_s12] sm:$0xff]  }
 0x18c   : > { %1398 = vmatpush3.msra.mxu0 %v637_v7  ;;  %1459 = vmatprep.mubr.bf16.mxu1 %v1636_v33  ;;  %v1232_v49 = vld [vmem:[%s389_s9] ss:$0 sm:$0xff]  ;;  %v1643_v33 = vld [vmem:[%s2142_s12 + $0x38] sm:$0xff]  }
 0x18d   : > { %1399 = vmatprep.subr.mxu0 %v636_v8 }
 0x18e   : > { %1400 = vmatpush3.msra.mxu0 %v636_v8 }
 0x18f   : > { %1401 = vmatprep.subr.mxu0 %v635_v9 }
 0x190   : > { %1402 = vmatpush3.msra.mxu0 %v635_v9 }
 0x191   : > { %1403 = vmatprep.subr.mxu0 %v634_v10 }
 0x192   : > { %1404 = vmatpush3.msra.mxu0 %v634_v10 }
 0x193   : > { %1405 = vmatprep.subr.mxu0 %v633_v11 }
 0x194   : > { %1406 = vmatpush3.msra.mxu0 %v633_v11 }
 0x195   : > { %1407 = vmatprep.subr.mxu0 %v632_v12 }
 0x196   : > { %1408 = vmatpush3.msra.mxu0 %v632_v12  ;;  %v1637_v12 = vld [vmem:[%s2142_s12 + $0x8] sm:$0xff]  }
 0x197   : > { %1409 = vmatprep.subr.mxu0 %v631_v13 }
 0x198   : > { %1410 = vmatpush3.msra.mxu0 %v631_v13  ;;  %v1638_v13 = vld [vmem:[%s2142_s12 + $0x10] sm:$0xff]  }
 0x199   : > { %1411 = vmatprep.subr.mxu0 %v630_v14 }
 0x19a   : > { %1412 = vmatpush3.msra.mxu0 %v630_v14  ;;  %v1639_v14 = vld [vmem:[%s2142_s12 + $0x18] sm:$0xff]  }
 0x19b   : > { %1413 = vmatprep.subr.mxu0 %v629_v15 }
 0x19c   : > { %1414 = vmatpush3.msra.mxu0 %v629_v15  ;;  %v1640_v15 = vld [vmem:[%s2142_s12 + $0x20] sm:$0xff]  }
 0x19d   : > { %1415 = vmatprep.subr.mxu0 %v628_v16 }
 0x19e   : > { %1416 = vmatpush3.msra.mxu0 %v628_v16  ;;  %v1641_v16 = vld [vmem:[%s2142_s12 + $0x28] sm:$0xff]  }
 0x19f   : > { %1417 = vmatprep.subr.mxu0 %v627_v17 }
 0x1a0   : > { %1418 = vmatpush3.msra.mxu0 %v627_v17  ;;  %v1642_v17 = vld [vmem:[%s2142_s12 + $0x30] sm:$0xff]   ;;  %s2439_s12 = sld [smem:[#allocation19_spill]] }
 0x1a1   : > { %1420 = vmatmul.mubr.f32.vlgmr.msra.gmra.mxu0 %v2209_v18 }
 0x1a2   : > { %1422 = vmatprep.mubr.f32.mxu0 %v2211_v19 }
 0x1a5   : > { %1423 = vmatmul.mubr.f32.gmra.mxu0 %v2215_v20 }
 0x1a6   : > { %1425 = vmatprep.mubr.f32.mxu0 %v2217_v21  ;;  %p1241_p6 = scmp.ne.s32.totalorder %s2439_s12, 3 }
 0x1a9   : > { %1426 = vmatmul.mubr.f32.gmra.mxu0 %v2221_v22 }
 0x1aa   : > { %1428 = vmatprep.mubr.f32.mxu0 %v2223_v23 }
 0x1ad   : > { %1429 = vmatmul.mubr.f32.gmra.mxu0 %v2227_v24 }
 0x1ae   : > { %1431 = vmatprep.mubr.f32.mxu0 %v2229_v25 }
 0x1b1   : > { %1432 = vmatmul.mubr.f32.gmra.mxu0 %v2233_v26 }
 0x1b2   : > { %1434 = vmatprep.mubr.f32.mxu0 %v2235_v27 }
 0x1b5   : > { %1435 = vmatmul.mubr.f32.gmra.mxu0 %v2239_v28 }
 0x1b6   : > { %1437 = vmatprep.mubr.f32.mxu0 %v2241_v29 }
 0x1b9   : > { %1438 = vmatmul.mubr.f32.gmra.mxu0 %v2245_v30 }
 0x1ba   : > { %1440 = vmatprep.mubr.f32.mxu0 %v2247_v31 }
 0x1bd   : > { %1441 = vmatmul.mubr.f32.gmra.mxu0 %v2251_v32 }
 0x261   : > { %v1421_v34 = vpop.f32.mrf.mxu0 }
 0x262   : > { %v722_v10 = vadd.f32 %v1421_v34, %v1232_v49 }
 0x263   : > { %v716_v35 = vpop.f32.mrf.mxu0 }
 0x264   : > { %v717_v8 = vadd.f32 %v1232_v49, %v716_v35 }
 0x265   : > { %v1424_v36 = vpop.f32.mrf.mxu0 }
 0x266   : > { %v732_v7 = vadd.f32 %v1424_v36, %v1232_v49  ;;  %v811_v11 = vpack.c.bf16 %v722_v10, %v717_v8 }
 0x267   : > { %v726_v37 = vpop.f32.mrf.mxu0 }
 0x268   : > { %v727_v4 = vadd.f32 %v1232_v49, %v726_v37 }
 0x269   : > { %v1427_v38 = vpop.f32.mrf.mxu0 }
 0x26a   : > { %v742_v3 = vadd.f32 %v1427_v38, %v1232_v49  ;;  %v812_v9 = vpack.c.bf16 %v732_v7, %v727_v4 }
 0x26b   : > { %v736_v39 = vpop.f32.mrf.mxu0 }
 0x26c   : > { %v737_v1 = vadd.f32 %v1232_v49, %v736_v39 }
 0x26d   : > { %v1430_v40 = vpop.f32.mrf.mxu0 }
 0x26e   : > { %v752_v0 = vadd.f32 %v1430_v40, %v1232_v49  ;;  %v813_v6 = vpack.c.bf16 %v742_v3, %v737_v1 }
 0x26f   : > { %v746_v41 = vpop.f32.mrf.mxu0 }
 0x270   : > { %v747_v62 = vadd.f32 %v1232_v49, %v746_v41 }
 0x271   : > { %v1433_v42 = vpop.f32.mrf.mxu0 }
 0x272   : > { %v762_v61 = vadd.f32 %v1433_v42, %v1232_v49  ;;  %v814_v2 = vpack.c.bf16 %v752_v0, %v747_v62 }
 0x273   : > { %v756_v43 = vpop.f32.mrf.mxu0 }
 0x274   : > { %v757_v59 = vadd.f32 %v1232_v49, %v756_v43 }
 0x275   : > { %v1436_v44 = vpop.f32.mrf.mxu0 }
 0x276   : > { %v772_v58 = vadd.f32 %v1436_v44, %v1232_v49  ;;  %v815_v63 = vpack.c.bf16 %v762_v61, %v757_v59 }
 0x277   : > { %v766_v45 = vpop.f32.mrf.mxu0 }
 0x278   : > { %v767_v56 = vadd.f32 %v1232_v49, %v766_v45 }
 0x279   : > { %v1439_v46 = vpop.f32.mrf.mxu0 }
 0x27a   : > { %v782_v54 = vadd.f32 %v1439_v46, %v1232_v49  ;;  %v816_v60 = vpack.c.bf16 %v772_v58, %v767_v56 }
 0x27b   : > { %v776_v47 = vpop.f32.mrf.mxu0 }
 0x27c   : > { %v777_v51 = vadd.f32 %v1232_v49, %v776_v47 }
 0x27d   : > { %v1442_v48 = vpop.f32.mrf.mxu0 }
 0x27e   : > { %v792_v52 = vadd.f32 %v1442_v48, %v1232_v49  ;;  %v817_v57 = vpack.c.bf16 %v782_v54, %v777_v51 }
 0x27f   : > { %v786_v50 = vpop.f32.mrf.mxu0 }
 0x280   : > { %v787_v53 = vadd.f32 %v1232_v49, %v786_v50 }
 0x282   : > { %v818_v55 = vpack.c.bf16 %v792_v52, %v787_v53 }
 0x284   : > { %1443 = vmatprep.subr.bf16.mxu1 %v818_v55 }
 0x285   : > { %1444 = vmatpush3.bf16.msra.mxu1 %v818_v55 }
 0x286   : > { %1445 = vmatprep.subr.bf16.mxu1 %v817_v57 }
 0x289   : > { %1446 = vmatpush3.bf16.msra.mxu1 %v817_v57 }
 0x28a   : > { %1447 = vmatprep.subr.bf16.mxu1 %v816_v60 }
 0x28d   : > { %1448 = vmatpush3.bf16.msra.mxu1 %v816_v60 }
 0x28e   : > { %1449 = vmatprep.subr.bf16.mxu1 %v815_v63 }
 0x291   : > { %1450 = vmatpush3.bf16.msra.mxu1 %v815_v63 }
 0x292   : > { %1451 = vmatprep.subr.bf16.mxu1 %v814_v2 }
 0x295   : > { %1452 = vmatpush3.bf16.msra.mxu1 %v814_v2 }
 0x296   : > { %1453 = vmatprep.subr.bf16.mxu1 %v813_v6 }
 0x299   : > { %1454 = vmatpush3.bf16.msra.mxu1 %v813_v6 }
 0x29a   : > { %1455 = vmatprep.subr.bf16.mxu1 %v812_v9 }
 0x29d   : > { %1456 = vmatpush3.bf16.msra.mxu1 %v812_v9 }
 0x29e   : > { %1457 = vmatprep.subr.bf16.mxu1 %v811_v11 }
 0x2a1   : > { %1458 = vmatpush3.bf16.msra.mxu1 %v811_v11 }
 0x2a4   : > { %1460 = vmatmul.mubr.bf16.vlgmr.msra.gmra.mxu1 %v1637_v12 }
 0x2a5   : > { %1463 = vmatprep.mubr.bf16.mxu1 %v1638_v13 }
 0x2ac   : > { %1464 = vmatmul.mubr.bf16.gmra.mxu1 %v1639_v14 }
 0x2ad   : > { %1467 = vmatprep.mubr.bf16.mxu1 %v1640_v15 }
 0x2b4   : > { %1468 = vmatmul.mubr.bf16.gmra.mxu1 %v1641_v16 }
 0x2b5   : > { %1471 = vmatprep.mubr.bf16.mxu1 %v1642_v17 }
 0x2bc   : > { %1472 = vmatmul.mubr.bf16.gmra.mxu1 %v1643_v33 }
 0x364   : > { %v1461_v34 = vpop.f32.mrf.mxu1 }
 0x365   : > { %v966_v35 = vadd.f32 %v1461_v34, %v2211_v19 }
 0x366   : > { %v901_v36 = vpop.f32.mrf.mxu1 }
 0x367   : > { %982 = vst [vmem:[#allocation3 + $0x10] sm:$0xff] %v966_v35  ;;  %v964_v37 = vadd.f32 %v901_v36, %v2194_v5 }
 0x368   : > { %v1462_v38 = vpop.f32.mrf.mxu1 }
 0x369   : > { %980 = vst [vmem:[#allocation3 + $0x28] sm:$0xff] %v964_v37  ;;  %v967_v39 = vadd.f32 %v1462_v38, %v2215_v20 }
 0x36a   : > { %v904_v40 = vpop.f32.mrf.mxu1 }
 0x36b   : > { %983 = vst [vmem:[#allocation3 + $0x40] sm:$0xff] %v967_v39  ;;  %v965_v41 = vadd.f32 %v904_v40, %v2209_v18 }
 0x36c   : > { %v1465_v42 = vpop.f32.mrf.mxu1 }
 0x36d   : > { %981 = vst [vmem:[#allocation3 + $0x68] sm:$0xff] %v965_v41  ;;  %v970_v43 = vadd.f32 %v1465_v42, %v2223_v23 }
 0x36e   : > { %v917_v44 = vpop.f32.mrf.mxu1 }
 0x36f   : > { %986 = vst [vmem:[#allocation3 + $0x70] sm:$0xff] %v970_v43  ;;  %v968_v19 = vadd.f32 %v917_v44, %v2217_v21 }
 0x370   : > { %v1466_v45 = vpop.f32.mrf.mxu1 }
 0x371   : > { %984 = vst [vmem:[#allocation3 + $0x48] sm:$0xff] %v968_v19  ;;  %v971_v5 = vadd.f32 %v1466_v45, %v2227_v24 }
 0x372   : > { %v920_v46 = vpop.f32.mrf.mxu1 }
 0x373   : > { %987 = vst [vmem:[#allocation3 + $0x38] sm:$0xff] %v971_v5  ;;  %v969_v20 = vadd.f32 %v920_v46, %v2221_v22 }
 0x374   : > { %v1469_v47 = vpop.f32.mrf.mxu1 }
 0x375   : > { %985 = vst [vmem:[#allocation3 + $0x30] sm:$0xff] %v969_v20  ;;  %v974_v18 = vadd.f32 %v1469_v47, %v2235_v27 }
 0x376   : > { %v933_v48 = vpop.f32.mrf.mxu1 }
 0x377   : > { %990 = vst [vmem:[#allocation3 + $0x18] sm:$0xff] %v974_v18  ;;  %v972_v23 = vadd.f32 %v933_v48, %v2229_v25 }
 0x378   : > { %v1470_v49 = vpop.f32.mrf.mxu1 }
 0x379   : > { %988 = vst [vmem:[#allocation3 + $0x20] sm:$0xff] %v972_v23  ;;  %v975_v21 = vadd.f32 %v1470_v49, %v2239_v28 }
 0x37a   : > { %v936_v50 = vpop.f32.mrf.mxu1 }
 0x37b   : > { %991 = vst [vmem:[#allocation3 + $0x58] sm:$0xff] %v975_v21  ;;  %v973_v24 = vadd.f32 %v936_v50, %v2233_v26 }
 0x37c   : > { %v1473_v51 = vpop.f32.mrf.mxu1 }
 0x37d   : > { %989 = vst [vmem:[#allocation3 + $0x78] sm:$0xff] %v973_v24  ;;  %v978_v22 = vadd.f32 %v1473_v51, %v2247_v31 }
 0x37e   : > { %v949_v52 = vpop.f32.mrf.mxu1 }
 0x37f   : > { %994 = vst [vmem:[#allocation3 + $0x60] sm:$0xff] %v978_v22  ;;  %v976_v27 = vadd.f32 %v949_v52, %v2241_v29 }
 0x380   : > { %v1474_v53 = vpop.f32.mrf.mxu1 }
 0x381   : > { %992 = vst [vmem:[#allocation3] sm:$0xff] %v976_v27  ;;  %v979_v25 = vadd.f32 %v1474_v53, %v2251_v32  ;;  %999 = sbr.rel (%p1241_p6) target bundleno = 919 (0x397), region = 68 }
 0x382   : > { %v952_v54 = vpop.f32.mrf.mxu1 }
 0x383   : > { %995 = vst [vmem:[#allocation3 + $0x50] sm:$0xff] %v979_v25  ;;  %v977_v28 = vadd.f32 %v952_v54, %v2245_v30 }
 0x385   : > { %993 = vst [vmem:[#allocation3 + $0x8] sm:$0xff] %v977_v28 }
 0x386   : > { %v1000_v26 = vld [vmem:[#allocation2 + $0x30] sm:$0xff]  ;;  %v1001_v29 = vld [vmem:[#allocation2] sm:$0xff]  ;;  %v1002_v30 = vld [vmem:[#allocation2 + $0x58] sm:$0xff]  ;;  %1032 = vst [vmem:[%s2168_s13 + $0x8] sm:$0xff] %v964_v37 }
 0x387   : > { %1033 = vst [vmem:[%s2168_s13 + $0x18] sm:$0xff] %v965_v41  ;;  %1034 = vst [vmem:[%s2168_s13 + $0x28] sm:$0xff] %v966_v35  ;;  %v1003_v31 = vld [vmem:[#allocation2 + $0x18] sm:$0xff]  ;;  %v1004_v32 = vld [vmem:[#allocation2 + $0x50] sm:$0xff] }
 0x388   : > { %1035 = vst [vmem:[%s2168_s13 + $0x38] sm:$0xff] %v967_v39  ;;  %1036 = vst [vmem:[%s2168_s13 + $0x48] sm:$0xff] %v968_v19  ;;  %v1005_v55 = vld [vmem:[#allocation2 + $0x68] sm:$0xff]  ;;  %v1008_v58 = vld [vmem:[#allocation2 + $0x40] sm:$0xff] }
 0x389   : > { %1037 = vst [vmem:[%s2168_s13 + $0x58] sm:$0xff] %v969_v20  ;;  %1038 = vst [vmem:[%s2168_s13 + $0x68] sm:$0xff] %v970_v43  ;;  %v1006_v56 = vld [vmem:[#allocation2 + $0x8] sm:$0xff]  ;;  %v1009_v59 = vld [vmem:[#allocation2 + $0x20] sm:$0xff] }
 0x38a   : > { %1039 = vst [vmem:[%s2168_s13 + $0x78] sm:$0xff] %v971_v5  ;;  %1040 = vst [vmem:[%s2168_s13 + $0x88] sm:$0xff] %v972_v23  ;;  %v1007_v57 = vld [vmem:[#allocation2 + $0x48] sm:$0xff]  ;;  %v1010_v60 = vld [vmem:[#allocation2 + $0x10] sm:$0xff] }
 0x38b   : > { %1041 = vst [vmem:[%s2168_s13 + $0x98] sm:$0xff] %v973_v24  ;;  %1042 = vst [vmem:[%s2168_s13 + $0xa8] sm:$0xff] %v974_v18  ;;  %v1011_v61 = vld [vmem:[#allocation2 + $0x38] sm:$0xff]  ;;  %v1012_v62 = vld [vmem:[#allocation2 + $0x60] sm:$0xff] }
 0x38c   : > { %1043 = vst [vmem:[%s2168_s13 + $0xb8] sm:$0xff] %v975_v21  ;;  %1044 = vst [vmem:[%s2168_s13 + $0xc8] sm:$0xff] %v976_v27  ;;  %v1013_v63 = vld [vmem:[#allocation2 + $0x70] sm:$0xff]  ;;  %v1014_v0 = vld [vmem:[#allocation2 + $0x78] sm:$0xff] }
 0x38d   : > { %1045 = vst [vmem:[%s2168_s13 + $0xd8] sm:$0xff] %v977_v28  ;;  %1046 = vst [vmem:[%s2168_s13 + $0xe8] sm:$0xff] %v978_v22  ;;  %v1015_v1 = vld [vmem:[#allocation2 + $0x28] sm:$0xff] }
 0x38e   : > { %1047 = vst [vmem:[%s2168_s13 + $0xf8] sm:$0xff] %v979_v25  ;;  %1016 = vst [vmem:[%s2168_s13] sm:$0xff] %v1000_v26 }
 0x38f   : > { %1017 = vst [vmem:[%s2168_s13 + $0x10] sm:$0xff] %v1001_v29  ;;  %1018 = vst [vmem:[%s2168_s13 + $0x20] sm:$0xff] %v1002_v30 }
 0x390   : > { %1019 = vst [vmem:[%s2168_s13 + $0x30] sm:$0xff] %v1003_v31  ;;  %1020 = vst [vmem:[%s2168_s13 + $0x40] sm:$0xff] %v1004_v32 }
 0x391   : > { %1021 = vst [vmem:[%s2168_s13 + $0x50] sm:$0xff] %v1005_v55  ;;  %1022 = vst [vmem:[%s2168_s13 + $0x60] sm:$0xff] %v1006_v56 }
 0x392   : > { %1023 = vst [vmem:[%s2168_s13 + $0x70] sm:$0xff] %v1007_v57  ;;  %1024 = vst [vmem:[%s2168_s13 + $0x80] sm:$0xff] %v1008_v58 }
 0x393   : > { %1025 = vst [vmem:[%s2168_s13 + $0x90] sm:$0xff] %v1009_v59  ;;  %1026 = vst [vmem:[%s2168_s13 + $0xa0] sm:$0xff] %v1010_v60 }
 0x394   : > { %1027 = vst [vmem:[%s2168_s13 + $0xb0] sm:$0xff] %v1011_v61  ;;  %1028 = vst [vmem:[%s2168_s13 + $0xc0] sm:$0xff] %v1012_v62 }
 0x395   : > { %1029 = vst [vmem:[%s2168_s13 + $0xd0] sm:$0xff] %v1013_v63  ;;  %1030 = vst [vmem:[%s2168_s13 + $0xe0] sm:$0xff] %v1014_v0 }
 0x396   : > { %1031 = vst [vmem:[%s2168_s13 + $0xf0] sm:$0xff] %v1015_v1 }
 0x397 PF: > { %s2440_s24 = sld [smem:[#allocation20_spill]]  ;;  %s1062_s15 = sshll.u32 %s2168_s13, 4  ;;  %s2323_s15 = int_to_ptr.vmem [resolvable:$true] %s1062_s15 }
 0x398   : > { %s2442_s8 = sld [smem:[#allocation28_spill]]  ;;  %s1049_s9 = scalar_lea.sflag [#allocation6], %s2130_s27 }
 0x399   : > { %s1754_s14 = scalar_lea.vmem %s2323_s15, 4096  ;;  %s1896_s21 = smov [#allocation12]  }
 0x39a   : > { %p1755_p8 = scmp.ne.s32.totalorder %s2323_s15, %s1754_s14  ;;  %s1758_s17 = sshll.u32 %s1896_s21, 4  ;;  %s1759_s17 = int_to_ptr.vmem [resolvable:$false] %s1758_s17 }
 0x39b   : > { %s1760_s16 = scalar_lea.vmem %s1759_s17, 8192  ;;  %p1761_p1 = scmp.lt.s32.totalorder %s2323_s15, %s1759_s17 }
 0x39c   : > { %p1756_p0 = pnand %p1755_p8, %p2048_p2  ;;  %p1762_p11 = scmp.lt.s32.totalorder %s1760_s16, %s1754_s14 }
 0x39d   : > { %s1250_s10 = sshll.u32 %s2440_s24, 12 }
 0x39e   : > { %s2320_s20 = scalar_lea.hbm %s2442_s8, %s1250_s10  ;;  %p1757_p5 = pneg %p1756_p0 }
 0x39f   : > { %p1763_p12 = por %p1762_p11, %p1761_p1 }
 0x3a1   : > { %p1764_p7 = pnand %p1763_p12, %p1757_p5 }
 0x3a3   : > { %1767 = shalt.err (!%p1764_p7)
}
 0x3a4   : > { %s1768_s13 = scalar_lea.hbm %s2320_s20, 4096  ;;  %s1772_s12 = scalar_lea.hbm %s2442_s8, 8192 }
 0x3a5   : > { %p1769_p3 = scmp.ne.s32.totalorder %s2320_s20, %s1768_s13  ;;  %p1773_p4 = scmp.lt.s32.totalorder %s2320_s20, %s2442_s8 }
 0x3a6   : > { %p1774_p13 = scmp.lt.s32.totalorder %s1772_s12, %s1768_s13 }
 0x3a7   : > { %p1770_p10 = pnand %p1769_p3, %p2048_p2 }
 0x3a8   : > { %p1775_p6 = por %p1774_p13, %p1773_p4 }
 0x3a9   : > { %p1771_p9 = pneg %p1770_p10 }
 0x3ab   : > { %p1776_p8 = pnand %p1775_p6, %p1771_p9 }
 0x3ad   : > { %1779 = shalt.err (!%p1776_p8)
}
 0x3ae   : > { %s1897_s28 = smov 256   ;;  %s1898_s5 = smov 16  }
 0x3af   : > { %1517 = dma.vmem_to_hbm [thread:$0]  (%p2048_p2), %s2323_s15, 4096, %s2320_s20, %s1049_s9, %s1897_s28, %s1897_s28, %s1898_s5  }
 0x3b0 PF: > { %s2443_s14 = sld [smem:[#allocation18_spill]]  ;;  %p1540_p0 = scmp.ge.s32.totalorder %s1886_s7, 2 }
 0x3b1   : > { %s2444_s21 = sld [smem:[#allocation22_spill]] }
 0x3b6   : > { %s1077_s17 = sand.u32 1, %s2443_s14  }
 0x3b7   : > { %p2445_p5 = scmp.ne.s32.totalorder %s2444_s21, 0  ;;  %s1078_s16 = scalar_lea.sflag [#allocation6], %s1077_s17 }
 0x3b9   : > { %p1534_p1 = pnand %p1540_p0, %p2445_p5 }
 0x3bb   : > { %p1535_p11 = pneg %p1534_p1 }
 0x3bd   : > { %1841 = dma.done.wait (%p1535_p11), %s1078_s16, 4096  }
 0x3be   : > { %1843 = vsyncadd (%p1535_p11), %s1078_s16, 4294963200  ;;  %s28_s7 = sadd.s32 1, %s1886_s7   ;;  %s2446_s21 = smov %s1850_s22 }
 0x3bf   : > { %p25_p12 = scmp.ge.s32.totalorder %s28_s7, 10   ;;  %s2447_s22 = smov %s1854_s23 }
 0x3c0   : > { %s2448_s23 = smov %s2102_s19  ;;  %s2449_s24 = smov %s1862_s25 }
 0x3c1   : > { %s2450_s25 = smov %s1866_s26  ;;  %s2451_s26 = smov %s2118_s2 }
 0x3c2   : > { %s2452_s27 = smov %s1878_s29  ;;  %s2453_s28 = smov %s1882_s30 }
 0x3c3   : > { %s2454_s29 = smov %s2457_s6  ;;  %s2455_s30 = smov %s2461_s3 }
 0x3c4   :  { %27 = sbr.rel (!%p25_p12) target bundleno = 19 (0x13), region = 130 }
 0x3c9   :  { %1083 = vsyncpa [#allocation5], 1 }
 0x3ca   :  { %1085 = vsyncpa [#allocation5 + $0x1], 1 }
 0x3cb   :  { %1086 = vsyncpa [#allocation8], 1 }
 0x3cc   :  { %1088 = vsyncpa [#allocation8 + $0x1], 1 }
 0x3cd   :  { %1089 = vsyncpa [#allocation11], 1 }
 0x3ce   :  { %1091 = vsyncpa [#allocation11 + $0x1], 1 }
 0x3cf   :  { %1092 = vsyncpa [#allocation6], 1 }
 0x3d0   :  { %1094 = vsyncpa [#allocation6 + $0x1], 1 }

</bundles_post_ra>
